<compile_context>
chip_gen: v7x
topology: tpu7x:2x2x1
jax: 0.10.0
libtpu: 0.0.40
codegen_flags: <defaults>
</compile_context>

<pallas_src>
import functools

import jax
import jax.numpy as jnp
from jax import lax
from jax.experimental import pallas as pl
from jax.experimental.pallas import tpu as pltpu

_MIB = 1024 * 1024


def _round_up(a, b):
    return (a + b - 1) // b * b


# ---------------------------------------------------------------------------
# Kernel body
# ---------------------------------------------------------------------------
def _ffn_kernel(x_ref, w13_ref, w2_ref, o_ref, acc_ref):
    """Grid = (row tiles [parallel], hidden chunks [arbitrary])."""
    h_idx = pl.program_id(1)

    @pl.when(h_idx == 0)
    def _():
        acc_ref[...] = jnp.zeros_like(acc_ref)

    compute_dtype = w13_ref.dtype
    # In-kernel cast: avoids a full HBM cast round-trip of the activations in
    # the wrapper (read-4B + write-2B per elem) when x arrives as f32.
    x = x_ref[...].astype(compute_dtype)               # (tm, dim)    bf16
    w13 = w13_ref[...]                                  # (dim, 2*th)  bf16, (K, N)
    th = w13.shape[1] // 2

    # Fused gate+up projection: one MXU matmul per hidden chunk with a clean
    # (M,K)x(K,N) feed — weights were transposed once at prep time.
    h = lax.dot_general(x, w13, (((1,), (0,)), ((), ())),
                        preferred_element_type=jnp.float32)          # (tm, 2*th) f32
    h1 = h[:, :th]                                      # w1-chunk projection
    h3 = h[:, th:]                                      # w3-chunk projection
    # SiLU via exp + approx reciprocal: both transcendentals stay on the EUP
    # slot; only the multiplies hit the VALU.
    g = (h1 * pl.reciprocal(1.0 + jnp.exp(-h1), approx=True)) * h3   # f32

    # Partial down-projection for this hidden chunk, accumulated in f32.
    acc_ref[...] += lax.dot_general(g.astype(w2_ref.dtype), w2_ref[...],
                                    (((1,), (0,)), ((), ())),
                                    preferred_element_type=jnp.float32)  # (tm, dim)

    @pl.when(h_idx == pl.num_programs(1) - 1)
    def _():
        # TODO(synk): training-mode dropout mask would be applied here.
        o_ref[...] = acc_ref[...].astype(o_ref.dtype)


# ---------------------------------------------------------------------------
# One-time weight prep (call OUTSIDE the per-step jit)
# ---------------------------------------------------------------------------
def prepare_ffn_weights(w1, w2, w3, *, th=None, compute_dtype=jnp.bfloat16):
    """w1, w3: (hidden, dim); w2: (dim, hidden) -- PyTorch nn.Linear (out, in).

    Returns canonical (K, N)-oriented, hidden-chunked weights:
      w13: (nh, dim, 2*th)  -- per chunk, [x@w1_chunk.T | x@w3_chunk.T] columns
      w2c: (nh, th,  dim)   -- per chunk rows of w2.T
    The transposes happen exactly once here, never in the kernel.
    """
    hidden, dim = w1.shape
    assert w3.shape == (hidden, dim) and w2.shape == (dim, hidden)
    assert hidden % 128 == 0, "hidden must be a multiple of 128"
    if th is None:
        # Prefer th that is a multiple of 256 (full MXU contraction depth on
        # v6e/v7x); 128 only as a fallback for small hidden dims.
        th = next((c for c in (512, 256, 128) if hidden % c == 0), hidden)
    assert hidden % th == 0 and th % 128 == 0
    nh = hidden // th
    w1c = w1.astype(compute_dtype).reshape(nh, th, dim).transpose(0, 2, 1)  # (nh, dim, th)
    w3c = w3.astype(compute_dtype).reshape(nh, th, dim).transpose(0, 2, 1)  # (nh, dim, th)
    w13 = jnp.concatenate([w1c, w3c], axis=2)                               # (nh, dim, 2*th)
    w2c = w2.astype(compute_dtype).T.reshape(nh, th, dim)                   # (nh, th, dim)
    return w13, w2c


# ---------------------------------------------------------------------------
# Generation-aware tiling / VMEM budget
# ---------------------------------------------------------------------------
def _tpu_hw():
    """(device_kind lowercase, usable VMEM capacity in bytes)."""
    kind = ""
    try:
        kind = jax.devices()[0].device_kind.lower()
    except Exception:
        pass
    vmem_cap = None
    try:
        vmem_cap = int(pltpu.get_tpu_info().vmem_capacity_bytes)
    except Exception:
        vmem_cap = None
    if vmem_cap is None or vmem_cap <= 0:
        if "v5" in kind or "v6" in kind:
            vmem_cap = 128 * _MIB
        else:
            vmem_cap = 64 * _MIB  # conservative (v7x and unknown chips)
    return kind, vmem_cap


def _default_tm(kind, dim, th):
    if "v5" in kind:
        # v5e roofline crossover ~240 FLOP/byte: tm=256 already ~compute-bound.
        return 256
    if "v7" in kind or "7x" in kind:
        # 64 MiB VMEM per TC: tm=512 with streamed weight chunks fits.
        return 512
    # v6e (and unknown big-VMEM chips): needs ~650 rows/tile to be compute-bound.
    if dim <= 4096 and th <= 512:
        return 1024
    return 512


def _vmem_estimate(tm, dim, th, xb, cb, ob):
    two_th = 2 * th
    return (2 * tm * dim * xb          # x tiles (double-buffered, input dtype)
            + 2 * dim * two_th * cb    # fused w1/w3 chunks (double-buffered)
            + 2 * th * dim * cb        # w2 chunks (double-buffered)
            + 2 * tm * dim * ob        # output tiles (double-buffered)
            + tm * dim * 4             # f32 accumulator scratch
            + 3 * tm * th * 4)         # live f32 intermediates (h, g)


# ---------------------------------------------------------------------------
# Forward wrapper
# ---------------------------------------------------------------------------
@functools.partial(jax.jit, static_argnames=("tm", "vmem_limit"))
def _feed_forward_impl(x, w13, w2c, *, tm, vmem_limit):
    batch, seq, dim = x.shape
    nh, wdim, two_th = w13.shape
    th = two_th // 2
    hidden = nh * th
    assert wdim == dim and w2c.shape == (nh, th, dim)
    out_dtype = x.dtype

    m = batch * seq
    m_pad = _round_up(m, tm)
    x2d = x.reshape(m, dim)                     # layout no-op; dtype untouched
    if m_pad != m:
        x2d = jnp.pad(x2d, ((0, m_pad - m), (0, 0)))

    out2d = pl.pallas_call(
        _ffn_kernel,
        out_shape=jax.ShapeDtypeStruct((m_pad, dim), out_dtype),
        grid_spec=pltpu.PrefetchScalarGridSpec(
            num_scalar_prefetch=0,
            grid=(m_pad // tm, nh),                    # rows x hidden chunks
            in_specs=[
                pl.BlockSpec((tm, dim), lambda i, h: (i, 0)),                # x rows
                pl.BlockSpec((None, dim, two_th), lambda i, h: (h, 0, 0)),   # fused w1/w3 chunk (K,N)
                pl.BlockSpec((None, th, dim), lambda i, h: (h, 0, 0)),       # w2 chunk (K,N)
            ],
            out_specs=pl.BlockSpec((tm, dim), lambda i, h: (i, 0)),
            scratch_shapes=[pltpu.VMEM((tm, dim), jnp.float32)],             # f32 accumulator
        ),
        compiler_params=pltpu.CompilerParams(
            dimension_semantics=("parallel", "arbitrary"),
            vmem_limit_bytes=vmem_limit,
        ),
    )(x2d, w13, w2c)

    return out2d[:m].reshape(batch, seq, dim)


def feed_forward(x, w13, w2c, *, tm=None):
    """x: (batch, seq, dim); w13/w2c from prepare_ffn_weights()."""
    batch, seq, dim = x.shape
    nh, wdim, two_th = w13.shape
    th = two_th // 2
    assert wdim == dim and w2c.shape == (nh, th, dim)

    kind, vmem_cap = _tpu_hw()
    vmem_ceiling = int(0.85 * vmem_cap)

    if tm is None:
        tm = _default_tm(kind, dim, th)
    m = batch * seq
    # Keep the row tile MXU-sized, but don't over-pad tiny inputs.
    tm = min(tm, _round_up(m, 128))

    cb = jnp.dtype(w13.dtype).itemsize
    xb = jnp.dtype(x.dtype).itemsize
    ob = jnp.dtype(x.dtype).itemsize
    # Shrink tm if the tile estimate wouldn't fit the generation's VMEM.
    while tm > 128 and _vmem_estimate(tm, dim, th, xb, cb, ob) > vmem_ceiling:
        tm = max(128, _round_up(tm // 2, 128))
    est = _vmem_estimate(tm, dim, th, xb, cb, ob)
    vmem_limit = int(min(max(int(1.25 * est), 32 * _MIB), vmem_ceiling))

    return _feed_forward_impl(x, w13, w2c, tm=tm, vmem_limit=vmem_limit)


# ---------------------------------------------------------------------------
# Pure-JAX reference mirroring the kernel's bf16-operand / f32-accum precision
# ---------------------------------------------------------------------------
def _reference(x, w1, w2, w3, compute_dtype=jnp.bfloat16):
    xb = x.astype(compute_dtype)
    h1 = jnp.einsum("bsd,hd->bsh", xb, w1.astype(compute_dtype),
                    preferred_element_type=jnp.float32)
    h3 = jnp.einsum("bsd,hd->bsh", xb, w3.astype(compute_dtype),
                    preferred_element_type=jnp.float32)
    g = (h1 * jax.nn.sigmoid(h1)) * h3
    y = jnp.einsum("bsh,dh->bsd", g.astype(compute_dtype), w2.astype(compute_dtype),
                   preferred_element_type=jnp.float32)
    return y.astype(x.dtype)


if __name__ == "__main__":
    # config: dim=128, hidden_dim=None, multiple_of=128, dropout=0.0
    dim = 128
    hidden = int(dim * 4 * 2 / 3)                                        # 341
    multiple_of = 128
    hidden = multiple_of * ((hidden + multiple_of - 1) // multiple_of)   # 384
    batch, seq = 2, 8

    key = jax.random.PRNGKey(0)
    kx, k1, k2, k3 = jax.random.split(key, 4)
    x = jax.random.normal(kx, (batch, seq, dim), dtype=jnp.float32)
    # deterministic synthetic weights (PyTorch nn.Linear layout: (out, in))
    w1 = jax.random.normal(k1, (hidden, dim), dtype=jnp.float32) * 0.02
    w2 = jax.random.normal(k2, (dim, hidden), dtype=jnp.float32) * 0.02
    w3 = jax.random.normal(k3, (hidden, dim), dtype=jnp.float32) * 0.02

    # One-time weight prep: bf16 cast, canonical (K, N) orientation, hidden
    # chunking (th=128 fallback here since 384 % 256 != 0 -> 3 chunks, which
    # exercises the accumulate-over-hidden grid axis).
    w13, w2c = prepare_ffn_weights(w1, w2, w3)

    out = feed_forward(x, w13, w2c)
    jax.block_until_ready(out)

    ref = _reference(x, w1, w2, w3)
    assert out.shape == (batch, seq, dim)
    # bf16 operands + EUP approx reciprocal -> loose tolerance.
    assert jnp.allclose(out, ref, atol=1e-2, rtol=1e-2), "mismatch vs reference"
    print("KERNEL_OK")
</pallas_src>

<mosaic_0001>
module attributes {stable_mosaic.version = 11 : i64} {
  func.func @_ffn_kernel(%arg0: i32, %arg1: i32, %arg2: memref<128x128xf32, #tpu.memory_space<vmem>>, %arg3: memref<1x128x256xbf16, #tpu.memory_space<vmem>>, %arg4: memref<1x128x128xbf16, #tpu.memory_space<vmem>>, %arg5: memref<128x128xf32, #tpu.memory_space<vmem>>, %arg6: memref<128x128xf32, #tpu.memory_space<vmem>>) attributes {dimension_semantics = [#tpu.dimension_semantics<parallel>, #tpu.dimension_semantics<arbitrary>], iteration_bounds = array<i64: 1, 3>, scalar_prefetch = 0 : i64, scratch_operands = 1 : i64, tpu.core_type = #tpu.core_type<tc>, window_params = [{transform_indices = @transform_0, window_bounds = array<i64: 128, 128>}, {transform_indices = @transform_1, window_bounds = array<i64: 1, 128, 256>}, {transform_indices = @transform_2, window_bounds = array<i64: 1, 128, 128>}, {transform_indices = @transform_3, window_bounds = array<i64: 128, 128>}]} {
    %c0_i32 = arith.constant 0 : i32
    %0 = arith.cmpi eq, %arg1, %c0_i32 : i32
    %1 = arith.extui %0 : i1 to i32
    %c0_i32_0 = arith.constant 0 : i32
    %2 = arith.cmpi ne, %1, %c0_i32_0 : i32
    scf.if %2 {
      %cst_16 = arith.constant 0.000000e+00 : f32
      %28 = vector.broadcast %cst_16 : f32 to vector<128x128xf32>
      %c0_17 = arith.constant 0 : index
      %c0_18 = arith.constant 0 : index
      %29 = vector.load %arg6[%c0_17, %c0_18] : memref<128x128xf32, #tpu.memory_space<vmem>>, vector<128x128xf32>
      tpu.vector_store %arg6[%c0_17, %c0_18], %28 {strides = array<i32>} : memref<128x128xf32, #tpu.memory_space<vmem>>, vector<128x128xf32>,
    } else {
    }
    %c0 = arith.constant 0 : index
    %c0_1 = arith.constant 0 : index
    %3 = vector.load %arg2[%c0, %c0_1] : memref<128x128xf32, #tpu.memory_space<vmem>>, vector<128x128xf32>
    %4 = arith.truncf %3 : vector<128x128xf32> to vector<128x128xbf16>
    %c0_2 = arith.constant 0 : index
    %c0_3 = arith.constant 0 : index
    %c0_4 = arith.constant 0 : index
    %5 = vector.load %arg3[%c0_2, %c0_3, %c0_4] : memref<1x128x256xbf16, #tpu.memory_space<vmem>>, vector<1x128x256xbf16>
    %6 = vector.shape_cast %5 : vector<1x128x256xbf16> to vector<128x256xbf16>
    %cst = arith.constant dense<0.000000e+00> : vector<128x256xf32>
    %7 = tpu.matmul %4, %6, %cst {dimension_numbers = #tpu.dot_dimension_numbers<[1], [0], [0], [1], [0, 0, 1, 1], [], []>} : vector<128x128xbf16>, vector<128x256xbf16>, vector<128x256xf32> -> vector<128x256xf32>
    %8 = vector.extract_strided_slice %7 {offsets = [0, 0], sizes = [128, 128], strides = [1, 1]} : vector<128x256xf32> to vector<128x128xf32>
    %9 = vector.extract_strided_slice %7 {offsets = [0, 128], sizes = [128, 128], strides = [1, 1]} : vector<128x256xf32> to vector<128x128xf32>
    %cst_5 = arith.constant 0.000000e+00 : f32
    %10 = vector.broadcast %cst_5 : f32 to vector<128x128xf32>
    %11 = arith.subf %10, %8 : vector<128x128xf32>
    %12 = math.exp %11 : vector<128x128xf32>
    %cst_6 = arith.constant 1.000000e+00 : f32
    %13 = vector.broadcast %cst_6 : f32 to vector<128x128xf32>
    %14 = arith.addf %13, %12 : vector<128x128xf32>
    %15 = tpu.reciprocal %14 {approx = true} : vector<128x128xf32> -> vector<128x128xf32>
    %16 = arith.mulf %8, %15 : vector<128x128xf32>
    %17 = arith.mulf %16, %9 : vector<128x128xf32>
    %c0_7 = arith.constant 0 : index
    %c0_8 = arith.constant 0 : index
    %18 = vector.load %arg6[%c0_7, %c0_8] : memref<128x128xf32, #tpu.memory_space<vmem>>, vector<128x128xf32>
    %19 = arith.truncf %17 : vector<128x128xf32> to vector<128x128xbf16>
    %c0_9 = arith.constant 0 : index
    %c0_10 = arith.constant 0 : index
    %c0_11 = arith.constant 0 : index
    %20 = vector.load %arg4[%c0_9, %c0_10, %c0_11] : memref<1x128x128xbf16, #tpu.memory_space<vmem>>, vector<1x128x128xbf16>
    %21 = vector.shape_cast %20 : vector<1x128x128xbf16> to vector<128x128xbf16>
    %cst_12 = arith.constant dense<0.000000e+00> : vector<128x128xf32>
    %22 = tpu.matmul %19, %21, %cst_12 {dimension_numbers = #tpu.dot_dimension_numbers<[1], [0], [0], [1], [0, 0, 1, 1], [], []>} : vector<128x128xbf16>, vector<128x128xbf16>, vector<128x128xf32> -> vector<128x128xf32>
    %23 = arith.addf %18, %22 : vector<128x128xf32>
    %c0_13 = arith.constant 0 : index
    %c0_14 = arith.constant 0 : index
    %24 = vector.load %arg6[%c0_13, %c0_14] : memref<128x128xf32, #tpu.memory_space<vmem>>, vector<128x128xf32>
    tpu.vector_store %arg6[%c0_13, %c0_14], %23 {strides = array<i32>} : memref<128x128xf32, #tpu.memory_space<vmem>>, vector<128x128xf32>,
    %c2_i32 = arith.constant 2 : i32
    %25 = arith.cmpi eq, %arg1, %c2_i32 : i32
    %26 = arith.extui %25 : i1 to i32
    %c0_i32_15 = arith.constant 0 : i32
    %27 = arith.cmpi ne, %26, %c0_i32_15 : i32
    scf.if %27 {
      %c0_16 = arith.constant 0 : index
      %c0_17 = arith.constant 0 : index
      %28 = vector.load %arg6[%c0_16, %c0_17] : memref<128x128xf32, #tpu.memory_space<vmem>>, vector<128x128xf32>
      %c0_18 = arith.constant 0 : index
      %c0_19 = arith.constant 0 : index
      %29 = vector.load %arg5[%c0_18, %c0_19] : memref<128x128xf32, #tpu.memory_space<vmem>>, vector<128x128xf32>
      tpu.vector_store %arg5[%c0_18, %c0_19], %28 {strides = array<i32>} : memref<128x128xf32, #tpu.memory_space<vmem>>, vector<128x128xf32>,
    } else {
    }
    return
  }
  func.func @transform_0(%arg0: i32, %arg1: i32) -> (i32, i32) {
    %c0_i32 = arith.constant 0 : i32
    %c0_i32_0 = arith.constant 0 : i32
    return %arg0, %c0_i32 : i32, i32
  }
  func.func @transform_1(%arg0: i32, %arg1: i32) -> (i32, i32, i32) {
    %c0_i32 = arith.constant 0 : i32
    %c0_i32_0 = arith.constant 0 : i32
    %c0_i32_1 = arith.constant 0 : i32
    return %arg1, %c0_i32, %c0_i32_0 : i32, i32, i32
  }
  func.func @transform_2(%arg0: i32, %arg1: i32) -> (i32, i32, i32) {
    %c0_i32 = arith.constant 0 : i32
    %c0_i32_0 = arith.constant 0 : i32
    %c0_i32_1 = arith.constant 0 : i32
    return %arg1, %c0_i32, %c0_i32_0 : i32, i32, i32
  }
  func.func @transform_3(%arg0: i32, %arg1: i32) -> (i32, i32) {
    %c0_i32 = arith.constant 0 : i32
    %c0_i32_0 = arith.constant 0 : i32
    return %arg0, %c0_i32 : i32, i32
  }
}

</mosaic_0001>

<bundles_post_ra>
// kernel: _feed_forward_impl.1
= control target key start
LH: loop header
LB: loop body
LE: loop exit
PB: predicated region body
PF: predicated region fallthrough
CT: control target
= control target key end

     0   :  { %8 = vsyncpa [#allocation4], 0  ;;  %s1780_s0 = inlined_call_operand.vmem [shape: f32[128,128], index: 0, kind: input, shape index: {}]   ;;  %s1781_s1 = inlined_call_operand.hbm [shape: bf16[3,128,256], index: 1, kind: input, shape index: {}]   ;;  %s1782_s2 = inlined_call_operand.hbm [shape: bf16[3,128,128], index: 2, kind: input, shape index: {}]   ;;  %s1783_s3 = inlined_call_operand.vmem [shape: f32[128,128], index: 3, kind: output, shape index: {}]  }
   0x1   :  { %10 = vsyncpa [#allocation4 + $0x1], 0 }
   0x2   :  { %11 = vsyncpa [#allocation6], 0 }
   0x3   :  { %13 = vsyncpa [#allocation6 + $0x1], 0  ;;  %s1395_s12 = smov 0   ;;  %s1397_s13 = smov 0  }
   0x4   :  { %s1399_s14 = smov 0   ;;  %s1401_s15 = smov 0  }
   0x5   :  { %s1403_s16 = smov 0   ;;  %s1405_s17 = smov 0  }
   0x6 LB: > { %s996_s18 = sadd.s32 4294967295, %s1365_s17   ;;  %s28_s19 = sadd.s32 1, %s1361_s16  ;;  %s1365_s17 = sphi %s1405_s17, %s19_s17   ;;  %s1361_s16 = sphi %s1403_s16, %s1794_s16   ;;  %s1357_s15 = sphi %s1401_s15, %s1793_s15   ;;  %s1353_s14 = sphi %s1399_s14, %s1792_s14   ;;  %s1349_s13 = sphi %s1397_s13, %s1791_s13   ;;  %s1345_s12 = sphi %s1395_s12, %s1790_s12  }
   0x7   : > { %p29_p0 = scmp.ge.s32.totalorder %s28_s19, 3  ;;  %s64_s20 = sadd.s32 1, %s1353_s14 }
   0x8   : > { %p71_p1 = scmp.ne.s32.totalorder %s1353_s14, %s1349_s13  ;;  %p72_p2 = scmp.eq.s32.totalorder %s1365_s17, 0 }
   0x9   : > { %s1796_s19 = smov (%p29_p0, %s28_s19), 0  ;;  %p77_p4 = scmp.ne.s32.totalorder %s1349_s13, %s1345_s12 }
   0xa   : > { %p1431_p3 = por %p72_p2, %p71_p1  ;;  %s61_s22 = ssub.s32 %s1361_s16, %s1796_s19 }
   0xb   : > { %p78_p5 = scmp.eq.s32.totalorder %s996_s18, 0  ;;  %p62_p6 = scmp.eq.s32.totalorder %s61_s22, 0 }
   0xc   : > { %p1100_p8 = scmp.lt.s32.totalorder %s1365_s17, 3  ;;  %s1447_s25 = sand.u32 1, %s1353_s14  }
   0xd   : > { %p1438_p7 = por %p78_p5, %p77_p4  ;;  %s1039_s26 = sshll.u32 %s1361_s16, 11 }
   0xe   : > { %s1444_s24 = scalar_select %p62_p6, %s1353_s14, %s64_s20  }
   0xf   : > { %s1786_s23 = scalar_select %p1438_p7, 1, 0 }
  0x10   : > { %s1000_s27 = sshll.u32 %s1447_s25, 7  ;;  %s1454_s30 = scalar_lea.hbm %s1781_s1, %s1039_s26 }
  0x11   : > { %s166_s4 = scalar_lea.vmem [#allocation3], %s1000_s27  ;;  %p1458_p9 = pnand %p1100_p8, %p1431_p3 }
  0x12   : > { %s173_s5 = sshll.u32 %s166_s4, 4  ;;  %s163_s7 = scalar_lea.sflag [#allocation4], %s1447_s25  ;;  %s1462_s5 = int_to_ptr.vmem [resolvable:$true] %s173_s5 }
  0x13   : > { %s1251_s8 = scalar_lea.hbm %s1454_s30, 2048  ;;  %p1253_p11 = pneg %p1458_p9 }
  0x14   : > { %p1252_p10 = scmp.ne.s32.totalorder %s1454_s30, %s1251_s8  ;;  %s1256_s11 = scalar_lea.hbm %s1781_s1, 6144 }
  0x15   : > { %p1257_p0 = scmp.lt.u32.totalorder %s1454_s30, %s1781_s1  ;;  %p1258_p1 = scmp.lt.u32.totalorder %s1256_s11, %s1251_s8 }
  0x16   : > { %p1254_p12 = pnand %p1253_p11, %p1252_p10  ;;  %p1260_p3 = scmp.lt.u32.totalorder %s1251_s8, %s1454_s30 }
  0x17   : > { %p1259_p2 = por %p1258_p1, %p1257_p0 }
  0x18   : > { %p1255_p13 = pneg %p1254_p12 }
  0x19   : > { %p1261_p4 = por %p1260_p3, %p1259_p2 }
  0x1b   : > { %p1262_p5 = pnand %p1261_p4, %p1255_p13 }
  0x1d   : > { %1265 = shalt.err (!%p1262_p5)
}
  0x1e   : > { %s1266_s20 = scalar_lea.vmem %s1462_s5, 2048  ;;  %s1367_s21 = smov [#allocation3]  }
  0x1f   : > { %p1267_p6 = scmp.ne.s32.totalorder %s1462_s5, %s1266_s20  ;;  %s1271_s22 = sshll.u32 %s1367_s21, 4  ;;  %s1272_s22 = int_to_ptr.vmem [resolvable:$false] %s1271_s22 }
  0x20   : > { %s1273_s26 = scalar_lea.vmem %s1272_s22, 4096  ;;  %p1274_p12 = scmp.lt.s32.totalorder %s1462_s5, %s1272_s22 }
  0x21   : > { %p1269_p8 = pnand %p1267_p6, %p1253_p11  ;;  %p1275_p0 = scmp.lt.s32.totalorder %s1273_s26, %s1266_s20 }
  0x23   : > { %p1270_p10 = pneg %p1269_p8  ;;  %p1276_p1 = por %p1275_p0, %p1274_p12 }
  0x25   : > { %p1277_p2 = pnand %p1276_p1, %p1270_p10 }
  0x27   : > { %1280 = shalt.err (!%p1277_p2)
}
  0x28   : > { %s1368_s27 = smov 128   ;;  %s1369_s28 = smov 8  }
  0x29   : > { %1096 = dma.hbm_to_vmem [thread:$0]  (!%p1458_p9), %s1454_s30, 2048, %s1462_s5, %s163_s7, %s1368_s27, %s1368_s27, %s1369_s28  }
  0x2a   : > { %p1006_p13 = scmp.ge.s32.totalorder %s1365_s17, 1  ;;  %p202_p3 = scmp.lt.s32.totalorder %s1365_s17, 4 }
  0x2b   : > { %s1003_s29 = sshll.u32 %s1447_s25, 6  ;;  %s1040_s8 = sshll.u32 %s1361_s16, 10 }
  0x2c   : > { %p1495_p4 = pnand %p1006_p13, %p202_p3  ;;  %s187_s9 = scalar_lea.vmem [#allocation5], %s1003_s29 }
  0x2d   : > { %s194_s10 = sshll.u32 %s187_s9, 4  ;;  %s1503_s18 = scalar_lea.hbm %s1782_s2, %s1040_s8  ;;  %s1505_s10 = int_to_ptr.vmem [resolvable:$true] %s194_s10 }
  0x2e   : > { %s184_s30 = scalar_lea.sflag [#allocation6], %s1447_s25  ;;  %s1281_s5 = scalar_lea.hbm %s1503_s18, 1024 }
  0x2f   : > { %p1282_p5 = scmp.ne.s32.totalorder %s1503_s18, %s1281_s5  ;;  %s1286_s21 = scalar_lea.hbm %s1782_s2, 3072 }
  0x30   : > { %p1287_p10 = scmp.lt.u32.totalorder %s1503_s18, %s1782_s2  ;;  %p1288_p12 = scmp.lt.u32.totalorder %s1286_s21, %s1281_s5 }
  0x31   : > { %p1284_p6 = pnand %p1282_p5, %p1253_p11  ;;  %p1290_p1 = scmp.lt.u32.totalorder %s1281_s5, %s1503_s18 }
  0x32   : > { %p1289_p0 = por %p1288_p12, %p1287_p10 }
  0x33   : > { %p1285_p8 = pneg %p1284_p6 }
  0x34   : > { %p1291_p2 = por %p1290_p1, %p1289_p0 }
  0x36   : > { %p1292_p13 = pnand %p1291_p2, %p1285_p8 }
  0x38   : > { %1295 = shalt.err (!%p1292_p13)
}
  0x39   : > { %s1296_s27 = scalar_lea.vmem %s1505_s10, 1024  ;;  %s1370_s28 = smov [#allocation5]  }
  0x3a   : > { %p1297_p3 = scmp.ne.s32.totalorder %s1505_s10, %s1296_s27  ;;  %s1301_s29 = sshll.u32 %s1370_s28, 4  ;;  %s1302_s29 = int_to_ptr.vmem [resolvable:$false] %s1301_s29 }
  0x3b   : > { %s1303_s8 = scalar_lea.vmem %s1302_s29, 2048  ;;  %p1304_p7 = scmp.lt.s32.totalorder %s1505_s10, %s1302_s29 }
  0x3c   : > { %p1299_p5 = pnand %p1297_p3, %p1253_p11  ;;  %p1305_p10 = scmp.lt.s32.totalorder %s1303_s8, %s1296_s27 }
  0x3e   : > { %p1300_p6 = pneg %p1299_p5  ;;  %p1306_p12 = por %p1305_p10, %p1304_p7 }
  0x40   : > { %p1307_p0 = pnand %p1306_p12, %p1300_p6 }
  0x42   : > { %1310 = shalt.err (!%p1307_p0)
}
  0x43   : > { %s1371_s9 = smov 64   ;;  %s1372_s11 = smov 4  }
  0x44   : > { %1099 = dma.hbm_to_vmem [thread:$0]  (!%p1458_p9), %s1503_s18, 1024, %s1505_s10, %s184_s30, %s1371_s9, %s1371_s9, %s1372_s11  }
  0x45   : > { %206 = sbr.rel (%p1495_p4) target bundleno = 653 (0x28d), region = 32  ;;  %s208_s12 = sand.u32 (!%p1495_p4), 1, %s1349_s13  }
  0x46   : > { %s1007_s5 = sshll.u32 (!%p1495_p4), %s208_s12, 7  ;;  %s209_s7 = scalar_lea.sflag (!%p1495_p4), [#allocation4], %s208_s12 }
  0x47   : > { %s1536_s20 = scalar_lea.vmem (!%p1495_p4), [#allocation3], %s1007_s5  ;;  %p1789_p7 = scmp.ne.s32.totalorder (!%p1495_p4), %s1786_s23, 0 }
  0x4c   : > { %1336 = dma.done.wait (%p1789_p7), %s209_s7, 2048  }
  0x4d   : > { %1338 = vsyncadd (%p1789_p7), %s209_s7, 4294965248  ;;  %s1008_s21 = sshll.u32 %s208_s12, 6  ;;  %s218_s6 = scalar_lea.sflag [#allocation6], %s208_s12 }
  0x4e   : > { %s1542_s25 = scalar_lea.vmem [#allocation5], %s1008_s21 }
  0x4f   : > { %1340 = dma.done.wait (%p1789_p7), %s218_s6, 1024  }
  0x50   : > { %1342 = vsyncadd (%p1789_p7), %s218_s6, 4294966272  ;;  %p1009_p9 = scmp.ne.s32.totalorder %s1357_s15, 0 }
  0x51   : > { %v1373_v0 = vmov (!%p1009_p9), 0.0  }
  0x52   : > { %270 = sbr.rel (%p1009_p9) target bundleno = 90 (0x5a), region = 44  ;;  %271 = vst [vmem:[#allocation2] sm:$0xff] (!%p1009_p9), %v1373_v0  ;;  %272 = vst [vmem:[#allocation2 + $0x8] sm:$0xff] (!%p1009_p9), %v1373_v0 }
  0x53   : > { %273 = vst [vmem:[#allocation2 + $0x10] sm:$0xff] (!%p1009_p9), %v1373_v0  ;;  %274 = vst [vmem:[#allocation2 + $0x18] sm:$0xff] (!%p1009_p9), %v1373_v0 }
  0x54   : > { %275 = vst [vmem:[#allocation2 + $0x20] sm:$0xff] (!%p1009_p9), %v1373_v0  ;;  %276 = vst [vmem:[#allocation2 + $0x28] sm:$0xff] (!%p1009_p9), %v1373_v0 }
  0x55   : > { %277 = vst [vmem:[#allocation2 + $0x30] sm:$0xff] (!%p1009_p9), %v1373_v0  ;;  %278 = vst [vmem:[#allocation2 + $0x38] sm:$0xff] (!%p1009_p9), %v1373_v0 }
  0x56   : > { %279 = vst [vmem:[#allocation2 + $0x40] sm:$0xff] (!%p1009_p9), %v1373_v0  ;;  %280 = vst [vmem:[#allocation2 + $0x48] sm:$0xff] (!%p1009_p9), %v1373_v0 }
  0x57   : > { %281 = vst [vmem:[#allocation2 + $0x50] sm:$0xff] (!%p1009_p9), %v1373_v0  ;;  %282 = vst [vmem:[#allocation2 + $0x58] sm:$0xff] (!%p1009_p9), %v1373_v0 }
  0x58   : > { %283 = vst [vmem:[#allocation2 + $0x60] sm:$0xff] (!%p1009_p9), %v1373_v0  ;;  %284 = vst [vmem:[#allocation2 + $0x68] sm:$0xff] (!%p1009_p9), %v1373_v0 }
  0x59   : > { %285 = vst [vmem:[#allocation2 + $0x70] sm:$0xff] %v1373_v0  ;;  %286 = vst [vmem:[#allocation2 + $0x78] sm:$0xff] %v1373_v0 }
  0x5a PF: > { %v1155_v1 = vld [vmem:[%s1536_s20 + $0x4] ss:$8 sps:$4 sm:$0xff]   ;;  %v1157_v2 = vld [vmem:[%s1536_s20] ss:$8 sps:$4 sm:$0xff]   ;;  %v1374_v3 = vmov 0   ;;  %v289_v21 = vld [vmem:[%s1780_s0 + $0x10] sm:$0xff] }
  0x5b   : > { %439 = vmatprep.mubr.bf16.mxu0 %v1374_v3  ;;  %407 = vmatprep.subr.bf16.mxu0 %v1155_v1  ;;  %v1158_v4 = vld [vmem:[%s1536_s20 + $0x14] ss:$8 sps:$4 sm:$0xff]   ;;  %v1160_v5 = vld [vmem:[%s1536_s20 + $0x10] ss:$8 sps:$4 sm:$0xff]   ;;  %v1161_v6 = vld [vmem:[%s1536_s20 + $0x24] ss:$8 sps:$4 sm:$0xff]  }
  0x5c   : > { %408 = vmatpush1.bf16.msra.mxu0 %v1157_v2  ;;  %v1163_v7 = vld [vmem:[%s1536_s20 + $0x20] ss:$8 sps:$4 sm:$0xff]   ;;  %v1164_v8 = vld [vmem:[%s1536_s20 + $0x34] ss:$8 sps:$4 sm:$0xff]   ;;  %v1166_v9 = vld [vmem:[%s1536_s20 + $0x30] ss:$8 sps:$4 sm:$0xff]  }
  0x5d   : > { %409 = vmatprep.subr.bf16.mxu0 %v1158_v4  ;;  %v1167_v10 = vld [vmem:[%s1536_s20 + $0x44] ss:$8 sps:$4 sm:$0xff]   ;;  %v1169_v11 = vld [vmem:[%s1536_s20 + $0x40] ss:$8 sps:$4 sm:$0xff]   ;;  %v1170_v12 = vld [vmem:[%s1536_s20 + $0x54] ss:$8 sps:$4 sm:$0xff]  }
  0x5e   : > { %v1172_v13 = vld [vmem:[%s1536_s20 + $0x50] ss:$8 sps:$4 sm:$0xff]   ;;  %v1173_v14 = vld [vmem:[%s1536_s20 + $0x64] ss:$8 sps:$4 sm:$0xff]   ;;  %v1175_v15 = vld [vmem:[%s1536_s20 + $0x60] ss:$8 sps:$4 sm:$0xff]  }
  0x5f   : > { %v1176_v16 = vld [vmem:[%s1536_s20 + $0x74] ss:$8 sps:$4 sm:$0xff]   ;;  %v1178_v17 = vld [vmem:[%s1536_s20 + $0x70] ss:$8 sps:$4 sm:$0xff]   ;;  %v287_v18 = vld [vmem:[%s1780_s0] sm:$0xff]  ;;  %p1034_p11 = scmp.ne.s32.totalorder %s1357_s15, 2 }
  0x60   : > { %410 = vmatpush1.bf16.msra.mxu0 %v1160_v5  ;;  %v288_v19 = vld [vmem:[%s1780_s0 + $0x8] sm:$0xff]  ;;  %v290_v22 = vld [vmem:[%s1780_s0 + $0x18] sm:$0xff]  ;;  %v291_v24 = vld [vmem:[%s1780_s0 + $0x20] sm:$0xff] }
  0x61   : > { %411 = vmatprep.subr.bf16.mxu0 %v1161_v6  ;;  %v303_v20 = vpack.c.bf16 %v288_v19, %v287_v18  ;;  %v304_v23 = vpack.c.bf16 %v290_v22, %v289_v21  ;;  %v292_v25 = vld [vmem:[%s1780_s0 + $0x28] sm:$0xff]  ;;  %v293_v27 = vld [vmem:[%s1780_s0 + $0x30] sm:$0xff]  ;;  %v294_v28 = vld [vmem:[%s1780_s0 + $0x38] sm:$0xff] }
  0x62   : > { %v305_v26 = vpack.c.bf16 %v292_v25, %v291_v24  ;;  %v306_v29 = vpack.c.bf16 %v294_v28, %v293_v27  ;;  %v295_v30 = vld [vmem:[%s1780_s0 + $0x40] sm:$0xff]  ;;  %v296_v31 = vld [vmem:[%s1780_s0 + $0x48] sm:$0xff]  ;;  %v297_v33 = vld [vmem:[%s1780_s0 + $0x50] sm:$0xff] }
  0x63   : > { %v307_v32 = vpack.c.bf16 %v296_v31, %v295_v30  ;;  %v298_v34 = vld [vmem:[%s1780_s0 + $0x58] sm:$0xff]  ;;  %v299_v36 = vld [vmem:[%s1780_s0 + $0x60] sm:$0xff]  ;;  %v300_v37 = vld [vmem:[%s1780_s0 + $0x68] sm:$0xff] }
  0x64   : > { %412 = vmatpush1.bf16.msra.mxu0 %v1163_v7  ;;  %v308_v35 = vpack.c.bf16 %v298_v34, %v297_v33  ;;  %v309_v38 = vpack.c.bf16 %v300_v37, %v299_v36  ;;  %v301_v39 = vld [vmem:[%s1780_s0 + $0x70] sm:$0xff]  ;;  %v302_v40 = vld [vmem:[%s1780_s0 + $0x78] sm:$0xff]  ;;  %v1179_v42 = vld [vmem:[%s1542_s25] sm:$0xff]  }
  0x65   : > { %413 = vmatprep.subr.bf16.mxu0 %v1164_v8  ;;  %v310_v41 = vpack.c.bf16 %v302_v40, %v301_v39  ;;  %1057 = vmatprep.subr.bf16.mxu1 %v1179_v42  ;;  %v1180_v43 = vld [vmem:[%s1542_s25 + $0x8] sm:$0xff]   ;;  %v1181_v44 = vld [vmem:[%s1542_s25 + $0x10] sm:$0xff]   ;;  %v1182_v45 = vld [vmem:[%s1542_s25 + $0x18] sm:$0xff]  }
  0x66   : > { %1058 = vmatpush3.bf16.msra.mxu1 %v1179_v42  ;;  %v1183_v46 = vld [vmem:[%s1542_s25 + $0x20] sm:$0xff]   ;;  %v1184_v47 = vld [vmem:[%s1542_s25 + $0x28] sm:$0xff]   ;;  %v1185_v48 = vld [vmem:[%s1542_s25 + $0x30] sm:$0xff]  }
  0x67   : > { %1059 = vmatprep.subr.bf16.mxu1 %v1180_v43  ;;  %v1186_v49 = vld [vmem:[%s1542_s25 + $0x38] sm:$0xff]  }
  0x68   : > { %414 = vmatpush1.bf16.msra.mxu0 %v1166_v9 }
  0x69   : > { %415 = vmatprep.subr.bf16.mxu0 %v1167_v10 }
  0x6a   : > { %1060 = vmatpush3.bf16.msra.mxu1 %v1180_v43 }
  0x6b   : > { %1061 = vmatprep.subr.bf16.mxu1 %v1181_v44 }
  0x6c   : > { %416 = vmatpush1.bf16.msra.mxu0 %v1169_v11 }
  0x6d   : > { %417 = vmatprep.subr.bf16.mxu0 %v1170_v12 }
  0x6e   : > { %1062 = vmatpush3.bf16.msra.mxu1 %v1181_v44 }
  0x6f   : > { %1063 = vmatprep.subr.bf16.mxu1 %v1182_v45 }
  0x70   : > { %418 = vmatpush1.bf16.msra.mxu0 %v1172_v13 }
  0x71   : > { %419 = vmatprep.subr.bf16.mxu0 %v1173_v14 }
  0x72   : > { %1064 = vmatpush3.bf16.msra.mxu1 %v1182_v45 }
  0x73   : > { %1065 = vmatprep.subr.bf16.mxu1 %v1183_v46 }
  0x74   : > { %420 = vmatpush1.bf16.msra.mxu0 %v1175_v15 }
  0x75   : > { %421 = vmatprep.subr.bf16.mxu0 %v1176_v16 }
  0x76   : > { %1066 = vmatpush3.bf16.msra.mxu1 %v1183_v46 }
  0x77   : > { %1067 = vmatprep.subr.bf16.mxu1 %v1184_v47 }
  0x78   : > { %422 = vmatpush1.bf16.msra.mxu0 %v1178_v17 }
  0x7a   : > { %1068 = vmatpush3.bf16.msra.mxu1 %v1184_v47 }
  0x7b   : > { %440 = vmatmul.mubr.bf16.vlgmr.msra.gmra.mrb[0].mxu0 %v303_v20  ;;  %1069 = vmatprep.subr.bf16.mxu1 %v1185_v48 }
  0x7c   : > { %449 = vmatprep.mubr.bf16.mxu0 %v1374_v3 }
  0x7e   : > { %1070 = vmatpush3.bf16.msra.mxu1 %v1185_v48 }
  0x7f   : > { %1071 = vmatprep.subr.bf16.mxu1 %v1186_v49 }
  0x82   : > { %1072 = vmatpush3.bf16.msra.mxu1 %v1186_v49 }
  0x83   : > { %450 = vmatmul.mubr.bf16.gmra.mrb[4].mxu0 %v304_v23 }
  0x84   : > { %459 = vmatprep.mubr.bf16.mxu0 %v1374_v3 }
  0x8b   : > { %460 = vmatmul.mubr.bf16.gmra.mrb[8].mxu0 %v305_v26 }
  0x8c   : > { %469 = vmatprep.mubr.bf16.mxu0 %v1374_v3 }
  0x93   : > { %470 = vmatmul.mubr.bf16.gmra.mrb[12].mxu0 %v306_v29 }
  0x94   : > { %479 = vmatprep.mubr.bf16.mxu0 %v1374_v3 }
  0x9b   : > { %480 = vmatmul.mubr.bf16.gmra.mrb[16].mxu0 %v307_v32 }
  0x9c   : > { %489 = vmatprep.mubr.bf16.mxu0 %v1374_v3 }
  0xa3   : > { %490 = vmatmul.mubr.bf16.gmra.mrb[20].mxu0 %v308_v35 }
  0xa4   : > { %499 = vmatprep.mubr.bf16.mxu0 %v1374_v3 }
  0xab   : > { %500 = vmatmul.mubr.bf16.gmra.mrb[24].mxu0 %v309_v38 }
  0xac   : > { %509 = vmatprep.mubr.bf16.mxu0 %v1374_v3 }
  0xb3   : > { %510 = vmatmul.mubr.bf16.gmra.mrb[28].mxu0 %v310_v41 }
 0x14e   : > { %v441_v50 = vpop.f32.mrb[0].mxu0 }
 0x14f   : > { %v520_v51 = vsub.f32 0.0, %v441_v50  ;;  %v443_v52 = vpop.f32.mrb[1].mxu0 }
 0x150   : > { %v445_v53 = vpop.f32.mrb[2].mxu0 }
 0x151   : > { %v536_v54 = vmul.f32 1.442695, %v520_v51  ;;  %v521_v55 = vsub.f32 0.0, %v445_v53  ;;  %v447_v56 = vpop.f32.mrb[3].mxu0 }
 0x153   : > { %1187 = vpow2.f32 %v536_v54  ;;  %v538_v57 = vmul.f32 1.442695, %v521_v55 }
 0x155   : > { %1189 = vpow2.f32 %v538_v57 }
 0x156   : > { %v1629_v58 = vpop.f32.mrb[4].mxu0 }
 0x157   : > { %v522_v59 = vsub.f32 0.0, %v1629_v58  ;;  %v1632_v60 = vpop.f32.mrb[5].mxu0 }
 0x158   : > { %v1634_v61 = vpop.f32.mrb[6].mxu0 }
 0x159   : > { %v540_v62 = vmul.f32 1.442695, %v522_v59  ;;  %v523_v63 = vsub.f32 0.0, %v1634_v61  ;;  %v1637_v0 = vpop.f32.mrb[7].mxu0 }
 0x15b   : > { %1191 = vpow2.f32 %v540_v62  ;;  %v542_v1 = vmul.f32 1.442695, %v523_v63 }
 0x15d   : > { %v1188_v2 = vpop.eup %1187  ;;  %1193 = vpow2.f32 %v542_v1 }
 0x15e   : > { %v568_v3 = vadd.f32 1.0, %v1188_v2  ;;  %v1639_v4 = vpop.f32.mrb[8].mxu0 }
 0x15f   : > { %v1190_v5 = vpop.eup %1189  ;;  %v524_v6 = vsub.f32 0.0, %v1639_v4  ;;  %v1642_v7 = vpop.f32.mrb[9].mxu0 }
 0x160   : > { %1195 = vrcp.f32 %v568_v3  ;;  %v569_v8 = vadd.f32 1.0, %v1190_v5  ;;  %v1644_v9 = vpop.f32.mrb[10].mxu0 }
 0x161   : > { %v544_v10 = vmul.f32 1.442695, %v524_v6  ;;  %v525_v11 = vsub.f32 0.0, %v1644_v9  ;;  %v1647_v12 = vpop.f32.mrb[11].mxu0 }
 0x162   : > { %1197 = vrcp.f32 %v569_v8 }
 0x163   : > { %1199 = vpow2.f32 %v544_v10  ;;  %v546_v13 = vmul.f32 1.442695, %v525_v11 }
 0x165   : > { %v1192_v14 = vpop.eup %1191  ;;  %1201 = vpow2.f32 %v546_v13 }
 0x166   : > { %v570_v15 = vadd.f32 1.0, %v1192_v14  ;;  %v1649_v16 = vpop.f32.mrb[12].mxu0 }
 0x167   : > { %v1194_v17 = vpop.eup %1193  ;;  %v526_v18 = vsub.f32 0.0, %v1649_v16  ;;  %v1652_v19 = vpop.f32.mrb[13].mxu0 }
 0x168   : > { %1203 = vrcp.f32 %v570_v15  ;;  %v571_v20 = vadd.f32 1.0, %v1194_v17  ;;  %v1654_v21 = vpop.f32.mrb[14].mxu0 }
 0x169   : > { %v548_v22 = vmul.f32 1.442695, %v526_v18  ;;  %v527_v23 = vsub.f32 0.0, %v1654_v21  ;;  %v1657_v24 = vpop.f32.mrb[15].mxu0 }
 0x16a   : > { %v1196_v25 = vpop.eup %1195  ;;  %1205 = vrcp.f32 %v571_v20 }
 0x16b   : > { %v600_v26 = vmul.f32 %v1196_v25, %v441_v50  ;;  %1207 = vpow2.f32 %v548_v22  ;;  %v550_v27 = vmul.f32 1.442695, %v527_v23 }
 0x16c   : > { %v1198_v28 = vpop.eup %1197 }
 0x16d   : > { %v1200_v29 = vpop.eup %1199  ;;  %v616_v30 = vmul.f32 %v600_v26, %v443_v52  ;;  %v601_v31 = vmul.f32 %v1198_v28, %v445_v53  ;;  %1209 = vpow2.f32 %v550_v27 }
 0x16e   : > { %v572_v32 = vadd.f32 1.0, %v1200_v29  ;;  %v1659_v33 = vpop.f32.mrb[16].mxu0 }
 0x16f   : > { %v1202_v34 = vpop.eup %1201  ;;  %v617_v35 = vmul.f32 %v601_v31, %v447_v56  ;;  %v528_v36 = vsub.f32 0.0, %v1659_v33  ;;  %v1662_v37 = vpop.f32.mrb[17].mxu0 }
 0x170   : > { %1211 = vrcp.f32 %v572_v32  ;;  %v573_v38 = vadd.f32 1.0, %v1202_v34  ;;  %v1664_v39 = vpop.f32.mrb[18].mxu0 }
 0x171   : > { %v552_v40 = vmul.f32 1.442695, %v528_v36  ;;  %v529_v41 = vsub.f32 0.0, %v1664_v39  ;;  %v1667_v42 = vpop.f32.mrb[19].mxu0  ;;  %v648_v43 = vpack.c.bf16 %v617_v35, %v616_v30 }
 0x172   : > { %v1204_v44 = vpop.eup %1203  ;;  %1213 = vrcp.f32 %v573_v38 }
 0x173   : > { %v602_v45 = vmul.f32 %v1204_v44, %v1629_v58  ;;  %1215 = vpow2.f32 %v552_v40  ;;  %v554_v46 = vmul.f32 1.442695, %v529_v41  ;;  %1073 = vmatprep.mubr.bf16.mxu1 %v648_v43 }
 0x174   : > { %v1206_v47 = vpop.eup %1205 }
 0x175   : > { %v1208_v48 = vpop.eup %1207  ;;  %v618_v49 = vmul.f32 %v602_v45, %v1632_v60  ;;  %v603_v50 = vmul.f32 %v1206_v47, %v1634_v61  ;;  %1217 = vpow2.f32 %v554_v46 }
 0x176   : > { %v574_v51 = vadd.f32 1.0, %v1208_v48  ;;  %v1672_v52 = vpop.f32.mrb[20].mxu0 }
 0x177   : > { %v1210_v53 = vpop.eup %1209  ;;  %v619_v54 = vmul.f32 %v603_v50, %v1637_v0  ;;  %v530_v55 = vsub.f32 0.0, %v1672_v52  ;;  %v1676_v56 = vpop.f32.mrb[21].mxu0 }
 0x178   : > { %1219 = vrcp.f32 %v574_v51  ;;  %v575_v57 = vadd.f32 1.0, %v1210_v53  ;;  %v1678_v58 = vpop.f32.mrb[22].mxu0 }
 0x179   : > { %v649_v59 = vpack.c.bf16 %v619_v54, %v618_v49  ;;  %v556_v62 = vmul.f32 1.442695, %v530_v55  ;;  %v531_v60 = vsub.f32 0.0, %v1678_v58  ;;  %v1681_v61 = vpop.f32.mrb[23].mxu0 }
 0x17a   : > { %v1212_v63 = vpop.eup %1211  ;;  %1221 = vrcp.f32 %v575_v57 }
 0x17b   : > { %v604_v1 = vmul.f32 %v1212_v63, %v1639_v4  ;;  %1223 = vpow2.f32 %v556_v62  ;;  %v558_v0 = vmul.f32 1.442695, %v531_v60  ;;  %1074 = vmatmul.mubr.bf16.vlgmr.msra.gmra.mrb[0].mxu1 %v649_v59 }
 0x17c   : > { %v1214_v2 = vpop.eup %1213 }
 0x17d   : > { %v1216_v3 = vpop.eup %1215  ;;  %v620_v5 = vmul.f32 %v604_v1, %v1642_v7  ;;  %v605_v6 = vmul.f32 %v1214_v2, %v1644_v9  ;;  %1225 = vpow2.f32 %v558_v0 }
 0x17e   : > { %v576_v8 = vadd.f32 1.0, %v1216_v3  ;;  %v1686_v10 = vpop.f32.mrb[24].mxu0 }
 0x17f   : > { %v1218_v11 = vpop.eup %1217  ;;  %v621_v13 = vmul.f32 %v605_v6, %v1647_v12  ;;  %v532_v14 = vsub.f32 0.0, %v1686_v10  ;;  %v1690_v15 = vpop.f32.mrb[25].mxu0 }
 0x180   : > { %1227 = vrcp.f32 %v576_v8  ;;  %v577_v4 = vadd.f32 1.0, %v1218_v11  ;;  %v1692_v17 = vpop.f32.mrb[26].mxu0 }
 0x181   : > { %v650_v18 = vpack.c.bf16 %v621_v13, %v620_v5  ;;  %v560_v20 = vmul.f32 1.442695, %v532_v14  ;;  %v533_v7 = vsub.f32 0.0, %v1692_v17  ;;  %v1695_v9 = vpop.f32.mrb[27].mxu0 }
 0x182   : > { %v1220_v22 = vpop.eup %1219  ;;  %1229 = vrcp.f32 %v577_v4  ;;  %v634_v4 = vld [vmem:[#allocation2 + $0x10] sm:$0xff] }
 0x183   : > { %v606_v23 = vmul.f32 %v1220_v22, %v1649_v16  ;;  %1231 = vpow2.f32 %v560_v20  ;;  %v562_v12 = vmul.f32 1.442695, %v533_v7  ;;  %1077 = vmatprep.mubr.bf16.mxu1 %v650_v18  ;;  %v635_v20 = vld [vmem:[#allocation2 + $0x18] sm:$0xff]  ;;  %v633_v22 = vld [vmem:[#allocation2 + $0x8] sm:$0xff] }
 0x184   : > { %v1222_v25 = vpop.eup %1221 }
 0x185   : > { %v1224_v26 = vpop.eup %1223  ;;  %v622_v27 = vmul.f32 %v606_v23, %v1652_v19  ;;  %v607_v28 = vmul.f32 %v1222_v25, %v1654_v21  ;;  %1233 = vpow2.f32 %v562_v12 }
 0x186   : > { %v578_v29 = vadd.f32 1.0, %v1224_v26  ;;  %v511_v30 = vpop.f32.mrb[28].mxu0  ;;  %v638_v26 = vld [vmem:[#allocation2 + $0x30] sm:$0xff] }
 0x187   : > { %v1226_v31 = vpop.eup %1225  ;;  %v623_v32 = vmul.f32 %v607_v28, %v1657_v24  ;;  %v534_v34 = vsub.f32 0.0, %v511_v30  ;;  %v513_v35 = vpop.f32.mrb[29].mxu0 }
 0x188   : > { %1235 = vrcp.f32 %v578_v29  ;;  %v579_v36 = vadd.f32 1.0, %v1226_v31  ;;  %v515_v16 = vpop.f32.mrb[30].mxu0  ;;  %v639_v29 = vld [vmem:[#allocation2 + $0x38] sm:$0xff] }
 0x189   : > { %v651_v38 = vpack.c.bf16 %v623_v32, %v622_v27  ;;  %v564_v40 = vmul.f32 1.442695, %v534_v34  ;;  %v535_v41 = vsub.f32 0.0, %v515_v16  ;;  %v517_v43 = vpop.f32.mrb[31].mxu0  ;;  %v636_v27 = vld [vmem:[#allocation2 + $0x20] sm:$0xff]  ;;  %v637_v32 = vld [vmem:[#allocation2 + $0x28] sm:$0xff] }
 0x18a   : > { %v1228_v44 = vpop.eup %1227  ;;  %1237 = vrcp.f32 %v579_v36 }
 0x18b   : > { %v608_v19 = vmul.f32 %v1228_v44, %v1659_v33  ;;  %1239 = vpow2.f32 %v564_v40  ;;  %v566_v21 = vmul.f32 1.442695, %v535_v41  ;;  %1078 = vmatmul.mubr.bf16.gmra.mrb[4].mxu1 %v651_v38  ;;  %v642_v40 = vld [vmem:[#allocation2 + $0x50] sm:$0xff]  ;;  %v640_v41 = vld [vmem:[#allocation2 + $0x40] sm:$0xff]  ;;  %v643_v44 = vld [vmem:[#allocation2 + $0x58] sm:$0xff] }
 0x18c   : > { %v1230_v45 = vpop.eup %1229 }
 0x18d   : > { %v1232_v46 = vpop.eup %1231  ;;  %v624_v24 = vmul.f32 %v608_v19, %v1662_v37  ;;  %v609_v47 = vmul.f32 %v1230_v45, %v1664_v39  ;;  %1241 = vpow2.f32 %v566_v21  ;;  %v641_v45 = vld [vmem:[#allocation2 + $0x48] sm:$0xff] }
 0x18e   : > { %v580_v48 = vadd.f32 1.0, %v1232_v46 }
 0x18f   : > { %v1234_v49 = vpop.eup %1233  ;;  %v625_v50 = vmul.f32 %v609_v47, %v1667_v42 }
 0x190   : > { %1243 = vrcp.f32 %v580_v48  ;;  %v581_v51 = vadd.f32 1.0, %v1234_v49 }
 0x191   : > { %v652_v53 = vpack.c.bf16 %v625_v50, %v624_v24  ;;  %v646_v50 = vld [vmem:[#allocation2 + $0x70] sm:$0xff] }
 0x192   : > { %v1236_v54 = vpop.eup %1235  ;;  %1245 = vrcp.f32 %v581_v51  ;;  %v644_v51 = vld [vmem:[#allocation2 + $0x60] sm:$0xff] }
 0x193   : > { %v610_v33 = vmul.f32 %v1236_v54, %v1672_v52  ;;  %1081 = vmatprep.mubr.bf16.mxu1 %v652_v53  ;;  %v647_v54 = vld [vmem:[#allocation2 + $0x78] sm:$0xff] }
 0x194   : > { %v1238_v55 = vpop.eup %1237 }
 0x195   : > { %v1240_v57 = vpop.eup %1239  ;;  %v626_v59 = vmul.f32 %v610_v33, %v1676_v56  ;;  %v611_v37 = vmul.f32 %v1238_v55, %v1678_v58 }
 0x196   : > { %v582_v39 = vadd.f32 1.0, %v1240_v57  ;;  %v645_v57 = vld [vmem:[#allocation2 + $0x68] sm:$0xff] }
 0x197   : > { %v1242_v62 = vpop.eup %1241  ;;  %v627_v60 = vmul.f32 %v611_v37, %v1681_v61 }
 0x198   : > { %1247 = vrcp.f32 %v582_v39  ;;  %v583_v42 = vadd.f32 1.0, %v1242_v62 }
 0x199   : > { %v653_v63 = vpack.c.bf16 %v627_v60, %v626_v59 }
 0x19a   : > { %v1244_v1 = vpop.eup %1243  ;;  %1249 = vrcp.f32 %v583_v42 }
 0x19b   : > { %v612_v0 = vmul.f32 %v1244_v1, %v1686_v10  ;;  %1082 = vmatmul.mubr.bf16.gmra.mrb[8].mxu1 %v653_v63  ;;  %v632_v10 = vld [vmem:[#allocation2] sm:$0xff] }
 0x19c   : > { %v1246_v52 = vpop.eup %1245 }
 0x19d   : > { %v628_v2 = vmul.f32 %v612_v0, %v1690_v15  ;;  %v613_v3 = vmul.f32 %v1246_v52, %v1692_v17 }
 0x19f   : > { %v629_v56 = vmul.f32 %v613_v3, %v1695_v9 }
 0x1a1   : > { %v654_v58 = vpack.c.bf16 %v629_v56, %v628_v2 }
 0x1a2   : > { %v1248_v5 = vpop.eup %1247 }
 0x1a3   : > { %v614_v6 = vmul.f32 %v1248_v5, %v511_v30  ;;  %1085 = vmatprep.mubr.bf16.mxu1 %v654_v58 }
 0x1a4   : > { %v1250_v61 = vpop.eup %1249 }
 0x1a5   : > { %v630_v8 = vmul.f32 %v614_v6, %v513_v35  ;;  %v615_v11 = vmul.f32 %v1250_v61, %v515_v16 }
 0x1a7   : > { %v631_v13 = vmul.f32 %v615_v11, %v517_v43 }
 0x1a9   : > { %v655_v14 = vpack.c.bf16 %v631_v13, %v630_v8 }
 0x1ab   : > { %1086 = vmatmul.mubr.bf16.gmra.mrb[12].mxu1 %v655_v14 }
 0x24e   : > { %v1075_v18 = vpop.f32.mrb[0].mxu1 }
 0x24f   : > { %v819_v7 = vadd.f32 %v1075_v18, %v634_v4  ;;  %v754_v15 = vpop.f32.mrb[1].mxu1 }
 0x250   : > { %v817_v17 = vadd.f32 %v754_v15, %v632_v10  ;;  %v1076_v23 = vpop.f32.mrb[2].mxu1 }
 0x251   : > { %835 = vst [vmem:[#allocation2 + $0x10] sm:$0xff] %v819_v7  ;;  %v820_v9 = vadd.f32 %v1076_v23, %v635_v20  ;;  %v757_v12 = vpop.f32.mrb[3].mxu1 }
 0x252   : > { %833 = vst [vmem:[#allocation2] sm:$0xff] %v817_v17  ;;  %v818_v25 = vadd.f32 %v757_v12, %v633_v22 }
 0x253   : > { %836 = vst [vmem:[#allocation2 + $0x18] sm:$0xff] %v820_v9 }
 0x254   : > { %834 = vst [vmem:[#allocation2 + $0x8] sm:$0xff] %v818_v25 }
 0x258   : > { %v855_v1 = vld [vmem:[#allocation2 + $0x10] sm:$0xff] (!%p1034_p11) }
 0x259   : > { %v853_v42 = vld [vmem:[#allocation2] sm:$0xff] (!%p1034_p11)  ;;  %871 = vst [vmem:[%s1783_s3 + $0x10] sm:$0xff] (!%p1034_p11), %v855_v1 }
 0x25a   : > { %869 = vst [vmem:[%s1783_s3] sm:$0xff] (!%p1034_p11), %v853_v42  ;;  %v856_v0 = vld [vmem:[#allocation2 + $0x18] sm:$0xff] (!%p1034_p11) }
 0x25b   : > { %v854_v63 = vld [vmem:[#allocation2 + $0x8] sm:$0xff] (!%p1034_p11)  ;;  %872 = vst [vmem:[%s1783_s3 + $0x18] sm:$0xff] (!%p1034_p11), %v856_v0 }
 0x25c   : > { %870 = vst [vmem:[%s1783_s3 + $0x8] sm:$0xff] (!%p1034_p11), %v854_v63 }
 0x25e   : > { %v1079_v28 = vpop.f32.mrb[4].mxu1 }
 0x25f   : > { %v823_v30 = vadd.f32 %v1079_v28, %v638_v26  ;;  %v770_v31 = vpop.f32.mrb[5].mxu1 }
 0x260   : > { %v821_v34 = vadd.f32 %v770_v31, %v636_v27  ;;  %v1080_v35 = vpop.f32.mrb[6].mxu1 }
 0x261   : > { %839 = vst [vmem:[#allocation2 + $0x30] sm:$0xff] %v823_v30  ;;  %v824_v36 = vadd.f32 %v1080_v35, %v639_v29  ;;  %v773_v16 = vpop.f32.mrb[7].mxu1 }
 0x262   : > { %837 = vst [vmem:[#allocation2 + $0x20] sm:$0xff] %v821_v34  ;;  %v822_v38 = vadd.f32 %v773_v16, %v637_v32 }
 0x263   : > { %840 = vst [vmem:[#allocation2 + $0x38] sm:$0xff] %v824_v36 }
 0x264   : > { %838 = vst [vmem:[#allocation2 + $0x28] sm:$0xff] %v822_v38 }
 0x268   : > { %v859_v3 = vld [vmem:[#allocation2 + $0x30] sm:$0xff] (!%p1034_p11) }
 0x269   : > { %v857_v52 = vld [vmem:[#allocation2 + $0x20] sm:$0xff] (!%p1034_p11)  ;;  %875 = vst [vmem:[%s1783_s3 + $0x30] sm:$0xff] (!%p1034_p11), %v859_v3 }
 0x26a   : > { %873 = vst [vmem:[%s1783_s3 + $0x20] sm:$0xff] (!%p1034_p11), %v857_v52  ;;  %v860_v56 = vld [vmem:[#allocation2 + $0x38] sm:$0xff] (!%p1034_p11) }
 0x26b   : > { %v858_v2 = vld [vmem:[#allocation2 + $0x28] sm:$0xff] (!%p1034_p11)  ;;  %876 = vst [vmem:[%s1783_s3 + $0x38] sm:$0xff] (!%p1034_p11), %v860_v56 }
 0x26c   : > { %874 = vst [vmem:[%s1783_s3 + $0x28] sm:$0xff] (!%p1034_p11), %v858_v2 }
 0x26e   : > { %v1083_v43 = vpop.f32.mrb[8].mxu1 }
 0x26f   : > { %v827_v19 = vadd.f32 %v1083_v43, %v642_v40  ;;  %v786_v21 = vpop.f32.mrb[9].mxu1 }
 0x270   : > { %v825_v46 = vadd.f32 %v786_v21, %v640_v41  ;;  %v1084_v24 = vpop.f32.mrb[10].mxu1 }
 0x271   : > { %843 = vst [vmem:[#allocation2 + $0x50] sm:$0xff] %v827_v19  ;;  %v828_v47 = vadd.f32 %v1084_v24, %v643_v44  ;;  %v789_v48 = vpop.f32.mrb[11].mxu1 }
 0x272   : > { %841 = vst [vmem:[#allocation2 + $0x40] sm:$0xff] %v825_v46  ;;  %v826_v49 = vadd.f32 %v789_v48, %v641_v45 }
 0x273   : > { %844 = vst [vmem:[#allocation2 + $0x58] sm:$0xff] %v828_v47 }
 0x274   : > { %842 = vst [vmem:[#allocation2 + $0x48] sm:$0xff] %v826_v49 }
 0x278   : > { %v863_v6 = vld [vmem:[#allocation2 + $0x50] sm:$0xff] (!%p1034_p11) }
 0x279   : > { %v861_v58 = vld [vmem:[#allocation2 + $0x40] sm:$0xff] (!%p1034_p11)  ;;  %879 = vst [vmem:[%s1783_s3 + $0x50] sm:$0xff] (!%p1034_p11), %v863_v6 }
 0x27a   : > { %877 = vst [vmem:[%s1783_s3 + $0x40] sm:$0xff] (!%p1034_p11), %v861_v58  ;;  %v864_v61 = vld [vmem:[#allocation2 + $0x58] sm:$0xff] (!%p1034_p11) }
 0x27b   : > { %v862_v5 = vld [vmem:[#allocation2 + $0x48] sm:$0xff] (!%p1034_p11)  ;;  %880 = vst [vmem:[%s1783_s3 + $0x58] sm:$0xff] (!%p1034_p11), %v864_v61 }
 0x27c   : > { %878 = vst [vmem:[%s1783_s3 + $0x48] sm:$0xff] (!%p1034_p11), %v862_v5 }
 0x27e   : > { %v1087_v53 = vpop.f32.mrb[12].mxu1  ;;  %852 = sbr.rel (%p1034_p11) target bundleno = 653 (0x28d), region = 48 }
 0x27f   : > { %v831_v33 = vadd.f32 %v1087_v53, %v646_v50  ;;  %v802_v55 = vpop.f32.mrb[13].mxu1 }
 0x280   : > { %v829_v59 = vadd.f32 %v802_v55, %v644_v51  ;;  %v1088_v37 = vpop.f32.mrb[14].mxu1 }
 0x281   : > { %847 = vst [vmem:[#allocation2 + $0x70] sm:$0xff] %v831_v33  ;;  %v832_v39 = vadd.f32 %v1088_v37, %v647_v54  ;;  %v805_v62 = vpop.f32.mrb[15].mxu1 }
 0x282   : > { %845 = vst [vmem:[#allocation2 + $0x60] sm:$0xff] %v829_v59  ;;  %v830_v60 = vadd.f32 %v805_v62, %v645_v57 }
 0x283   : > { %848 = vst [vmem:[#allocation2 + $0x78] sm:$0xff] %v832_v39 }
 0x284   : > { %846 = vst [vmem:[#allocation2 + $0x68] sm:$0xff] %v830_v60 }
 0x288   : > { %v867_v13 = vld [vmem:[#allocation2 + $0x70] sm:$0xff] }
 0x289   : > { %v865_v8 = vld [vmem:[#allocation2 + $0x60] sm:$0xff]  ;;  %883 = vst [vmem:[%s1783_s3 + $0x70] sm:$0xff] %v867_v13 }
 0x28a   : > { %881 = vst [vmem:[%s1783_s3 + $0x60] sm:$0xff] %v865_v8  ;;  %v868_v14 = vld [vmem:[#allocation2 + $0x78] sm:$0xff] }
 0x28b   : > { %v866_v11 = vld [vmem:[#allocation2 + $0x68] sm:$0xff]  ;;  %884 = vst [vmem:[%s1783_s3 + $0x78] sm:$0xff] %v868_v14 }
 0x28c   : > { %882 = vst [vmem:[%s1783_s3 + $0x68] sm:$0xff] %v866_v11 }
 0x28d PF: > { %s19_s17 = sadd.s32 1, %s1365_s17   ;;  %s1790_s12 = smov %s1349_s13 }
 0x28e   : > { %p16_p4 = scmp.ge.s32.totalorder %s19_s17, 5   ;;  %s1791_s13 = smov %s1353_s14 }
 0x28f   : > { %s1792_s14 = smov %s1444_s24  ;;  %s1793_s15 = smov %s1361_s16 }
 0x290   : > { %s1794_s16 = smov %s1796_s19  ;;  %18 = sbr.rel (!%p16_p4) target bundleno = 6 (0x6), region = 96 }
 0x297   :  { %907 = vsyncpa [#allocation4], 1 }
 0x298   :  { %909 = vsyncpa [#allocation4 + $0x1], 1 }
 0x299   :  { %910 = vsyncpa [#allocation6], 1 }
 0x29a   :  { %912 = vsyncpa [#allocation6 + $0x1], 1 }

</bundles_post_ra>
